<compile_context>
chip_gen: v7x
topology: tpu7x:2x2x1
jax: 0.10.0
libtpu: 0.0.40
codegen_flags: <defaults>
</compile_context>

<pallas_src>
import math

import jax
import jax.numpy as jnp
from jax.experimental import pallas as pl
from jax.experimental.pallas import tpu as pltpu


def _hbm_copy_kernel(w_hbm, o_hbm, sem):
    """Single direct HBM->HBM DMA: no VMEM staging, no grid, no tiling."""
    cp = pltpu.make_async_copy(w_hbm, o_hbm, sem)
    cp.start()
    cp.wait()


def identity_layer_2d_forward(weight: jax.Array, *, force_kernel: bool = False) -> jax.Array:
    """Pallas implementation of IdentityLayer2D.forward(): returns `weight`.

    Default: pure identity (zero-copy) for every size — matches the PyTorch
    module, which returns the Parameter itself.
    force_kernel=True: produce a distinct HBM buffer via one HBM->HBM DMA.
    """
    if not force_kernel:
        # Identity never requires HBM traffic; returning the array directly is
        # the single biggest win (a 1 GiB f32 copy would cost ~0.65-2.5 ms of
        # pure read+write HBM traffic for zero semantic gain).
        return weight

    m, n = weight.shape
    itemsize = jnp.dtype(weight.dtype).itemsize

    return pl.pallas_call(
        _hbm_copy_kernel,
        out_shape=jax.ShapeDtypeStruct((m, n), weight.dtype),
        # Keep both operands in HBM; the kernel sees raw refs and DMAs directly.
        in_specs=[pl.BlockSpec(memory_space=pl.ANY)],
        out_specs=pl.BlockSpec(memory_space=pl.ANY),
        scratch_shapes=[pltpu.SemaphoreType.DMA],
        # Advisory: pure memory traffic -> read m*n + write m*n bytes.
        cost_estimate=pl.CostEstimate(
            flops=0,
            transcendentals=0,
            bytes_accessed=2 * m * n * itemsize,
        ),
    )(weight)


def xavier_normal(key, m, n, dtype=jnp.float32):
    """Deterministic equivalent of torch.nn.init.xavier_normal_ for an (m, n) weight."""
    std = math.sqrt(2.0 / (m + n))
    return (jax.random.normal(key, (m, n), dtype=jnp.float32) * std).astype(dtype)


if __name__ == "__main__":
    # Small shapes consistent with the module: weight is (m, n).
    m, n = 16, 32
    key = jax.random.PRNGKey(0)
    weight = xavier_normal(key, m, n)

    # 1) Default (optimized) path: pure identity, no copy issued — matches
    #    PyTorch forward() returning the Parameter itself.
    out_fast = jax.block_until_ready(identity_layer_2d_forward(weight))
    assert out_fast.shape == (m, n)
    assert out_fast.dtype == weight.dtype
    assert bool(jnp.array_equal(out_fast, weight))

    # 2) Kernel path: exercise the direct HBM->HBM DMA copy once.
    out_kernel = jax.block_until_ready(
        identity_layer_2d_forward(weight, force_kernel=True))
    assert out_kernel.shape == (m, n)
    assert out_kernel.dtype == weight.dtype
    assert bool(jnp.array_equal(out_kernel, weight))

    # 3) A second dtype (bf16) through the DMA path.
    w_bf16 = xavier_normal(jax.random.PRNGKey(1), 64, 256, dtype=jnp.bfloat16)
    out_bf16 = jax.block_until_ready(
        identity_layer_2d_forward(w_bf16, force_kernel=True))
    assert bool(jnp.array_equal(out_bf16, w_bf16))

    # 4) Ragged / unaligned shape (previously the latent failure mode of the
    #    tiled fallback): the HBM->HBM DMA needs no (8,128) alignment at all.
    w_ragged = xavier_normal(jax.random.PRNGKey(2), 17, 130)
    out_ragged = jax.block_until_ready(
        identity_layer_2d_forward(w_ragged, force_kernel=True))
    assert bool(jnp.array_equal(out_ragged, w_ragged))

    print("KERNEL_OK")
</pallas_src>

<mosaic_0001>
module attributes {stable_mosaic.version = 11 : i64} {
  func.func @_hbm_copy_kernel(%arg0: memref<16x32xf32, #tpu.memory_space<any>>, %arg1: memref<16x32xf32, #tpu.memory_space<any>>, %arg2: memref<!tpu.dma_semaphore, #tpu.memory_space<semaphore_mem>>) attributes {dimension_semantics = [], scalar_prefetch = 0 : i64, scratch_operands = 1 : i64, tpu.core_type = #tpu.core_type<tc>} {
    tpu.enqueue_dma source(%arg0 : memref<16x32xf32, #tpu.memory_space<any>>) target(%arg1 : memref<16x32xf32, #tpu.memory_space<any>>) target_semaphore(%arg2 : memref<!tpu.dma_semaphore, #tpu.memory_space<semaphore_mem>>)
    tpu.wait_dma2 semaphore(%arg2 : memref<!tpu.dma_semaphore, #tpu.memory_space<semaphore_mem>>) src(%arg0 : memref<16x32xf32, #tpu.memory_space<any>>) dst(%arg1 : memref<16x32xf32, #tpu.memory_space<any>>)
    return
  }
}

</mosaic_0001>

<bundles_post_ra>
// kernel: tpu_custom_call.1
= control target key start
LH: loop header
LB: loop body
LE: loop exit
PB: predicated region body
PF: predicated region fallthrough
CT: control target
= control target key end

     0   :  { %s34_s6 = smov [#allocation2]   ;;  %s35_s7 = smov [#allocation3]   ;;  %s53_s0 = inlined_call_operand.hbm [shape: f32[16,32], index: 0, kind: input, shape index: {}]   ;;  %s54_s1 = inlined_call_operand.hbm [shape: f32[16,32], index: 1, kind: output, shape index: {}]  }
   0x1   :  { %s36_s8 = smov 0  }
   0x2   :  { %18 = dma.general %s53_s0, 256, %s54_s1, %s34_s6, %s35_s7, [#allocation4], %s36_s8, 0  }
   0x3   :  { %32 = dma.done.wait [#allocation2], 256 }
   0x4   :  { %33 = vsyncadd [#allocation2], 4294967040 }
   0x5   :  { %22 = vsyncmov [#allocation2] }
   0x8   :  { %s23_s13 = vpop.sfrf %22 }
   0x9   :  { %p28_p0 = scmp.ne.s32.totalorder %s23_s13, 0 }
   0xb   :  { %27 = shalt.err (%p28_p0)  }

</bundles_post_ra>
